<compile_context>
chip_gen: v7x
topology: tpu7x:2x2x1
jax: 0.10.0
libtpu: 0.0.40
codegen_flags: <defaults>
</compile_context>

<pallas_src>
import functools

import jax
import jax.numpy as jnp
from jax.experimental import pallas as pl
from jax.experimental.pallas import tpu as pltpu


def _relation_attention_kernel(dep_ref, feat_ref, mask_ref,
                               w1_ref, b1_ref, w2_ref, b2_ref, out_ref,
                               *, b_blk, seq_len, hidden):
    # dep_ref  : [B_BLK*L, D]   (pre-flattened rows for the fc1 matmul)
    # feat_ref : [B_BLK, L, D]
    # mask_ref : [B_BLK, L]
    # w1_ref   : [D, H], b1_ref: [1, H], w2_ref: [1, H], b2_ref: SMEM (1, 1)
    # out_ref  : [B_BLK, D]

    # fc1 + ReLU: one (B_BLK*L, D) x (D, H) MXU matmul per grid step.
    h = jnp.dot(dep_ref[...], w1_ref[...], preferred_element_type=jnp.float32)
    h = jnp.maximum(h + b1_ref[...], 0.0)                        # [B_BLK*L, H]

    # fc2 as VPU multiply + lane reduce (avoids a width-1 MXU matmul).
    # Leading-dim split (L is a sublane multiple or the full dim) -> layout-free reshape.
    h3 = h.reshape(b_blk, seq_len, hidden)
    w2_row = w2_ref[...].reshape(1, 1, hidden)
    s = jnp.sum(h3 * w2_row, axis=-1) + b2_ref[0, 0]             # [B_BLK, L], lane-dense

    # Masked softmax over L (lane axis), lane-dense.
    mask = mask_ref[...]                                         # [B_BLK, L]
    logits = s * mask + (1.0 - mask) * (-1e30)
    m = jnp.max(logits, axis=-1, keepdims=True)                  # [B_BLK, 1]
    e = jnp.exp(logits - m)
    denom = jnp.sum(e, axis=-1, keepdims=True)
    p = e * pl.reciprocal(denom, approx=False)                   # [B_BLK, L]  (exact recip)

    # Weighted sum over L: VPU multiply + reduction -> lane-dense [B_BLK, D] store.
    feat = feat_ref[...]                                         # [B_BLK, L, D]
    out = jnp.sum(feat * p[:, :, None], axis=1)                  # [B_BLK, D]
    out_ref[...] = out.astype(out_ref.dtype)


def _pick_batch_block(n, seq_len, target_rows=1024):
    """Largest batch block (a divisor of n) keeping ~target_rows matmul rows per step.
    Blocks smaller than the full batch are kept multiples of 8 so (B_BLK, D)/(B_BLK, L)
    blocks stay sublane-aligned; whole-batch fallback is always layout-legal."""
    if n * seq_len <= target_rows:
        return n
    best = n
    cap = max(8, target_rows // max(seq_len, 1))
    for b in range(8, cap + 1, 8):
        if n % b == 0:
            best = b
    return best


def relation_attention(feature, dep_tags_v, dmask, w1, b1, w2, b2, *, b_blk=None):
    """feature, dep_tags_v: [N, L, D]; dmask: [N, L]; w1: [D, H] (x @ W layout);
    b1: [H]; w2: [H]; b2: [1].  Returns [N, D]."""
    N, L, D = feature.shape
    H = w1.shape[1]
    if b_blk is None:
        b_blk = _pick_batch_block(N, L)
    assert N % b_blk == 0, "batch block must divide N"

    feature = feature.astype(jnp.float32)
    dep_flat = dep_tags_v.astype(jnp.float32).reshape(N * L, D)  # free leading-dim collapse
    mask2 = dmask.astype(jnp.float32)                            # [N, L] lane-dense
    w1_f = w1.astype(jnp.float32)
    b1_row = b1.reshape(1, H).astype(jnp.float32)
    w2_row = w2.reshape(1, H).astype(jnp.float32)
    b2_s = b2.reshape(1, 1).astype(jnp.float32)                  # scalar -> SMEM

    kernel = functools.partial(_relation_attention_kernel,
                               b_blk=b_blk, seq_len=L, hidden=H)

    out = pl.pallas_call(
        kernel,
        out_shape=jax.ShapeDtypeStruct((N, D), jnp.float32),
        grid_spec=pltpu.PrefetchScalarGridSpec(
            num_scalar_prefetch=0,
            grid=(N // b_blk,),
            in_specs=[
                pl.BlockSpec((b_blk * L, D), lambda i: (i, 0)),       # dep rows (flattened)
                pl.BlockSpec((b_blk, L, D), lambda i: (i, 0, 0)),     # feature
                pl.BlockSpec((b_blk, L), lambda i: (i, 0)),           # mask (lane-dense)
                pl.BlockSpec((D, H), lambda i: (0, 0)),               # fc1 weight (transposed)
                pl.BlockSpec((1, H), lambda i: (0, 0)),               # fc1 bias
                pl.BlockSpec((1, H), lambda i: (0, 0)),               # fc2 weight as a row
                pl.BlockSpec(memory_space=pltpu.MemorySpace.SMEM),    # fc2 bias (scalar)
            ],
            out_specs=pl.BlockSpec((b_blk, D), lambda i: (i, 0)),     # lane-dense [B_BLK, D]
        ),
        compiler_params=pltpu.CompilerParams(
            dimension_semantics=("parallel",)),
    )(dep_flat, feature, mask2, w1_f, b1_row, w2_row, b2_s)
    return out


if __name__ == "__main__":
    # Small shapes consistent with the module (in_dim=D, hidden_dim=H).
    N, L, D, H = 4, 8, 64, 32

    key = jax.random.PRNGKey(0)
    k1, k2, k3, k4, k5, k6, k7 = jax.random.split(key, 7)

    feature = jax.random.normal(k1, (N, L, D), dtype=jnp.float32)
    dep_tags_v = jax.random.normal(k2, (N, L, D), dtype=jnp.float32)
    dmask = (jax.random.uniform(k3, (N, L)) > 0.3).astype(jnp.float32)
    dmask = dmask.at[:, 0].set(1.0)   # ensure at least one valid position per row

    # Parameters stored already transposed relative to PyTorch's nn.Linear.weight
    # so the kernel computes x @ W + b.
    w1 = jax.random.normal(k4, (D, H), dtype=jnp.float32) * 0.1
    b1 = jax.random.normal(k5, (H,), dtype=jnp.float32) * 0.1
    w2 = jax.random.normal(k6, (H,), dtype=jnp.float32) * 0.1
    b2 = jax.random.normal(k7, (1,), dtype=jnp.float32) * 0.1

    out = relation_attention(feature, dep_tags_v, dmask, w1, b1, w2, b2)
    out = jax.block_until_ready(out)

    # Pure-JAX reference for correctness.
    q = jnp.maximum(dep_tags_v @ w1 + b1, 0.0) @ w2.reshape(H, 1) + b2    # [N, L, 1]
    q = q[..., 0]                                                         # [N, L]
    logits = q * dmask + (1.0 - dmask) * (-1e30)
    p = jax.nn.softmax(logits, axis=1)                                    # [N, L]
    ref = jnp.einsum("nld,nl->nd", feature, p)                            # [N, D]

    assert out.shape == (N, D)
    assert jnp.allclose(out, ref, atol=1e-4, rtol=1e-4), "mismatch vs reference"
    print("KERNEL_OK")
</pallas_src>

<mosaic_0001>
module attributes {stable_mosaic.version = 11 : i64} {
  func.func @_relation_attention_kernel(%arg0: i32, %arg1: memref<32x64xf32, #tpu.memory_space<vmem>>, %arg2: memref<4x8x64xf32, #tpu.memory_space<vmem>>, %arg3: memref<4x8xf32, #tpu.memory_space<vmem>>, %arg4: memref<64x32xf32, #tpu.memory_space<vmem>>, %arg5: memref<1x32xf32, #tpu.memory_space<vmem>>, %arg6: memref<1x32xf32, #tpu.memory_space<vmem>>, %arg7: memref<1x1xf32, #tpu.memory_space<smem>>, %arg8: memref<4x64xf32, #tpu.memory_space<vmem>>) attributes {dimension_semantics = [#tpu.dimension_semantics<parallel>], iteration_bounds = array<i64: 1>, scalar_prefetch = 0 : i64, scratch_operands = 0 : i64, tpu.core_type = #tpu.core_type<tc>, window_params = [{transform_indices = @transform_0, window_bounds = array<i64: 32, 64>}, {transform_indices = @transform_1, window_bounds = array<i64: 4, 8, 64>}, {transform_indices = @transform_2, window_bounds = array<i64: 4, 8>}, {pipeline_mode = #tpu.pipeline_mode<synchronous>, transform_indices = @transform_3, window_bounds = array<i64: 64, 32>}, {pipeline_mode = #tpu.pipeline_mode<synchronous>, transform_indices = @transform_4, window_bounds = array<i64: 1, 32>}, {pipeline_mode = #tpu.pipeline_mode<synchronous>, transform_indices = @transform_5, window_bounds = array<i64: 1, 32>}, {transform_indices = @transform_6, window_bounds = array<i64: 1, 1>}, {transform_indices = @transform_7, window_bounds = array<i64: 4, 64>}]} {
    %c0 = arith.constant 0 : index
    %c0_0 = arith.constant 0 : index
    %0 = vector.load %arg1[%c0, %c0_0] : memref<32x64xf32, #tpu.memory_space<vmem>>, vector<32x64xf32>
    %c0_1 = arith.constant 0 : index
    %c0_2 = arith.constant 0 : index
    %1 = vector.load %arg4[%c0_1, %c0_2] : memref<64x32xf32, #tpu.memory_space<vmem>>, vector<64x32xf32>
    %cst = arith.constant dense<0.000000e+00> : vector<32x32xf32>
    %2 = tpu.matmul %0, %1, %cst {dimension_numbers = #tpu.dot_dimension_numbers<[1], [0], [0], [1], [0, 0, 1, 1], [], []>} : vector<32x64xf32>, vector<64x32xf32>, vector<32x32xf32> -> vector<32x32xf32>
    %c0_3 = arith.constant 0 : index
    %c0_4 = arith.constant 0 : index
    %3 = vector.load %arg5[%c0_3, %c0_4] : memref<1x32xf32, #tpu.memory_space<vmem>>, vector<1x32xf32>
    %4 = vector.broadcast %3 : vector<1x32xf32> to vector<32x32xf32>
    %5 = arith.addf %2, %4 : vector<32x32xf32>
    %cst_5 = arith.constant 0.000000e+00 : f32
    %6 = vector.broadcast %cst_5 : f32 to vector<32x32xf32>
    %7 = arith.maximumf %5, %6 : vector<32x32xf32>
    %8 = vector.shape_cast %7 : vector<32x32xf32> to vector<4x8x32xf32>
    %c0_6 = arith.constant 0 : index
    %c0_7 = arith.constant 0 : index
    %9 = vector.load %arg6[%c0_6, %c0_7] : memref<1x32xf32, #tpu.memory_space<vmem>>, vector<1x32xf32>
    %10 = vector.shape_cast %9 : vector<1x32xf32> to vector<1x1x32xf32>
    %11 = vector.broadcast %10 : vector<1x1x32xf32> to vector<4x8x32xf32>
    %12 = arith.mulf %8, %11 : vector<4x8x32xf32>
    %cst_8 = arith.constant dense<0.000000e+00> : vector<4x8xf32>
    %13 = vector.multi_reduction <add>, %12, %cst_8 [2] : vector<4x8x32xf32> to vector<4x8xf32>
    %c0_9 = arith.constant 0 : index
    %c0_10 = arith.constant 0 : index
    %14 = memref.load %arg7[%c0_9, %c0_10] : memref<1x1xf32, #tpu.memory_space<smem>>
    %15 = vector.broadcast %14 : f32 to vector<4x8xf32>
    %16 = arith.addf %13, %15 : vector<4x8xf32>
    %c0_11 = arith.constant 0 : index
    %c0_12 = arith.constant 0 : index
    %17 = vector.load %arg3[%c0_11, %c0_12] : memref<4x8xf32, #tpu.memory_space<vmem>>, vector<4x8xf32>
    %18 = arith.mulf %16, %17 : vector<4x8xf32>
    %cst_13 = arith.constant 1.000000e+00 : f32
    %19 = vector.broadcast %cst_13 : f32 to vector<4x8xf32>
    %20 = arith.subf %19, %17 : vector<4x8xf32>
    %cst_14 = arith.constant -1.000000e+30 : f32
    %21 = vector.broadcast %cst_14 : f32 to vector<4x8xf32>
    %22 = arith.mulf %20, %21 : vector<4x8xf32>
    %23 = arith.addf %18, %22 : vector<4x8xf32>
    %cst_15 = arith.constant dense<0xFF800000> : vector<4xf32>
    %24 = vector.multi_reduction <maximumf>, %23, %cst_15 [1] : vector<4x8xf32> to vector<4xf32>
    %25 = vector.shape_cast %24 : vector<4xf32> to vector<4x1xf32>
    %26 = vector.broadcast %25 : vector<4x1xf32> to vector<4x8xf32>
    %27 = arith.subf %23, %26 : vector<4x8xf32>
    %28 = math.exp %27 : vector<4x8xf32>
    %cst_16 = arith.constant dense<0.000000e+00> : vector<4xf32>
    %29 = vector.multi_reduction <add>, %28, %cst_16 [1] : vector<4x8xf32> to vector<4xf32>
    %30 = vector.shape_cast %29 : vector<4xf32> to vector<4x1xf32>
    %31 = tpu.reciprocal %30 : vector<4x1xf32> -> vector<4x1xf32>
    %32 = vector.broadcast %31 : vector<4x1xf32> to vector<4x8xf32>
    %33 = arith.mulf %28, %32 : vector<4x8xf32>
    %c0_17 = arith.constant 0 : index
    %c0_18 = arith.constant 0 : index
    %c0_19 = arith.constant 0 : index
    %34 = vector.load %arg2[%c0_17, %c0_18, %c0_19] : memref<4x8x64xf32, #tpu.memory_space<vmem>>, vector<4x8x64xf32>
    %35 = vector.shape_cast %33 : vector<4x8xf32> to vector<4x8x1xf32>
    %36 = vector.broadcast %35 : vector<4x8x1xf32> to vector<4x8x64xf32>
    %37 = arith.mulf %34, %36 : vector<4x8x64xf32>
    %cst_20 = arith.constant dense<0.000000e+00> : vector<4x64xf32>
    %38 = vector.multi_reduction <add>, %37, %cst_20 [1] : vector<4x8x64xf32> to vector<4x64xf32>
    %c0_21 = arith.constant 0 : index
    %c0_22 = arith.constant 0 : index
    %39 = vector.load %arg8[%c0_21, %c0_22] : memref<4x64xf32, #tpu.memory_space<vmem>>, vector<4x64xf32>
    tpu.vector_store %arg8[%c0_21, %c0_22], %38 {strides = array<i32>} : memref<4x64xf32, #tpu.memory_space<vmem>>, vector<4x64xf32>,
    return
  }
  func.func @transform_0(%arg0: i32) -> (i32, i32) {
    %c0_i32 = arith.constant 0 : i32
    %c0_i32_0 = arith.constant 0 : i32
    return %arg0, %c0_i32 : i32, i32
  }
  func.func @transform_1(%arg0: i32) -> (i32, i32, i32) {
    %c0_i32 = arith.constant 0 : i32
    %c0_i32_0 = arith.constant 0 : i32
    %c0_i32_1 = arith.constant 0 : i32
    return %arg0, %c0_i32, %c0_i32_0 : i32, i32, i32
  }
  func.func @transform_2(%arg0: i32) -> (i32, i32) {
    %c0_i32 = arith.constant 0 : i32
    %c0_i32_0 = arith.constant 0 : i32
    return %arg0, %c0_i32 : i32, i32
  }
  func.func @transform_3(%arg0: i32) -> (i32, i32) {
    %c0_i32 = arith.constant 0 : i32
    %c0_i32_0 = arith.constant 0 : i32
    %c0_i32_1 = arith.constant 0 : i32
    return %c0_i32, %c0_i32_0 : i32, i32
  }
  func.func @transform_4(%arg0: i32) -> (i32, i32) {
    %c0_i32 = arith.constant 0 : i32
    %c0_i32_0 = arith.constant 0 : i32
    %c0_i32_1 = arith.constant 0 : i32
    return %c0_i32, %c0_i32_0 : i32, i32
  }
  func.func @transform_5(%arg0: i32) -> (i32, i32) {
    %c0_i32 = arith.constant 0 : i32
    %c0_i32_0 = arith.constant 0 : i32
    %c0_i32_1 = arith.constant 0 : i32
    return %c0_i32, %c0_i32_0 : i32, i32
  }
  func.func @transform_6(%arg0: i32) -> (i32, i32) {
    %c0_i32 = arith.constant 0 : i32
    %c0_i32_0 = arith.constant 0 : i32
    %c0_i32_1 = arith.constant 0 : i32
    return %c0_i32, %c0_i32_0 : i32, i32
  }
  func.func @transform_7(%arg0: i32) -> (i32, i32) {
    %c0_i32 = arith.constant 0 : i32
    %c0_i32_0 = arith.constant 0 : i32
    return %arg0, %c0_i32 : i32, i32
  }
}

</mosaic_0001>

<bundles_post_ra>
// kernel: tpu_custom_call.1
= control target key start
LH: loop header
LB: loop body
LE: loop exit
PB: predicated region body
PF: predicated region fallthrough
CT: control target
= control target key end

     0   :  { %v181_v3 = vlaneseq  ;;  %vm47_vm0 = vcmask 523264   ;;  %s748_s0 = inlined_call_operand.vmem [shape: f32[32,64], index: 0, kind: input, shape index: {}]   ;;  %s749_s1 = inlined_call_operand.vmem [shape: f32[4,8,64], index: 1, kind: input, shape index: {}]   ;;  %s750_s2 = inlined_call_operand.vmem [shape: f32[4,8], index: 2, kind: input, shape index: {}]   ;;  %s751_s3 = inlined_call_operand.vmem [shape: f32[64,32], index: 3, kind: input, shape index: {}]   ;;  %s752_s4 = inlined_call_operand.vmem [shape: f32[1,32], index: 4, kind: input, shape index: {}]   ;;  %s753_s5 = inlined_call_operand.vmem [shape: f32[1,32], index: 5, kind: input, shape index: {}]   ;;  %s754_s6 = inlined_call_operand.<no memory space> [shape: f32[1,1], index: 6, kind: input, shape index: {}]   ;;  %s755_s7 = inlined_call_operand.hbm [shape: f32[4,64], index: 7, kind: output, shape index: {}]  }
   0x1   :  { %v32_v0 = vld [vmem:[%s751_s3] sm:$0xff]  ;;  %v33_v1 = vld [vmem:[%s751_s3 + $0x8] sm:$0xff]  ;;  %v34_v2 = vld [vmem:[%s751_s3 + $0x10] sm:$0xff] }
   0x2   :  { %v519_v4 = vpack.c.bf16 %v33_v1, %v32_v0  ;;  %v35_v5 = vld [vmem:[%s751_s3 + $0x18] sm:$0xff]  ;;  %v36_v7 = vld [vmem:[%s751_s3 + $0x20] sm:$0xff]  ;;  %v37_v8 = vld [vmem:[%s751_s3 + $0x28] sm:$0xff]  ;;  %v182_v9 = vshrl.u32 %v181_v3, 7  ;;  %v273_v10 = vand.u32 127, %v181_v3 }
   0x3   :  { %v523_v6 = vpack.c.bf16 %v35_v5, %v34_v2  ;;  %v28_v11 = vld [vmem:[%s748_s0] sm:$0xff]  ;;  %v30_v12 = vld [vmem:[%s748_s0 + $0x10] sm:$0xff]  ;;  %v527_v16 = vpack.c.bf16 %v37_v8, %v36_v7 }
   0x4   :  { %520 = vmatprep.subr.bf16.mxu0 %v519_v4  ;;  %535 = vmatprep.subr.bf16.mxu1 %v519_v4  ;;  %v179_v13 = vld [vmem:[%s750_s2] sm:$0xf]  ;;  %v650_v14 = vsub.s32 1, %v182_v9  ;;  %v652_v15 = vsub.s32 %v273_v10, %v182_v9  ;;  %v654_v18 = vsub.s32 0, %v182_v9 }
   0x5   :  { %522 = vmatpush3.bf16.msra.mxu0 %v519_v4  ;;  %539 = vmatpush3.bf16.msra.mxu1 %v519_v4  ;;  %v217_v17 = vsub.f32 1.0, %v179_v13 }
   0x6   :  { %524 = vmatprep.subr.bf16.mxu0 %v523_v6  ;;  %536 = vmatprep.subr.bf16.mxu1 %v523_v6 }
   0x7   :  { %13 = vsyncpa [#allocation4], 0  ;;  %v38_v19 = vld [vmem:[%s751_s3 + $0x30] sm:$0xff]  ;;  %v39_v20 = vld [vmem:[%s751_s3 + $0x38] sm:$0xff]  ;;  %513 = vmatprep.mubr.msk.f32.mxu0 %vm47_vm0, %v28_v11  ;;  %516 = vmatprep.mubr.msk.f32.mxu1 %vm47_vm0, %v30_v12  ;;  %v191_v21 = vrot.slane %v179_v13, %v650_v14  ;;  %v665_v22 = vsub.s32 2, %v182_v9  ;;  %v184_v23 = vrot.slane %v179_v13, %v654_v18  ;;  %v669_v27 = vsub.s32 3, %v182_v9 }
   0x8   :  { %v218_v24 = vmul.f32 -1e+30, %v217_v17  ;;  %v531_v25 = vpack.c.bf16 %v39_v20, %v38_v19  ;;  %v29_v30 = vld [vmem:[%s748_s0 + $0x8] sm:$0xff]  ;;  %v31_v31 = vld [vmem:[%s748_s0 + $0x18] sm:$0xff]  ;;  %v479_v33 = vld [vmem:[%s752_s4] ss:$0 sm:$0xff]  ;;  %v174_v0 = vstv %s754_s6 }
   0x9   :  { %526 = vmatpush3.bf16.msra.mxu0 %v523_v6  ;;  %540 = vmatpush3.bf16.msra.mxu1 %v523_v6  ;;  %v198_v26 = vrot.slane %v179_v13, %v665_v22  ;;  %v205_v29 = vrot.slane %v179_v13, %v669_v27  ;;  %v484_v42 = vld [vmem:[%s753_s5] ss:$0 sm:$0xff]  ;;  %vm160_vm1 = vcmask 261120   ;;  %v581_v56 = vmov 0  }
   0xa   :  { %528 = vmatprep.subr.bf16.mxu0 %v527_v16  ;;  %537 = vmatprep.subr.bf16.mxu1 %v527_v16  ;;  %v223_v28 = vrot.slane %v218_v24, %v654_v18  ;;  %v230_v32 = vrot.slane %v218_v24, %v650_v14  ;;  %v244_v55 = vrot.slane %v218_v24, %v669_v27  ;;  %vm290_vm2 = vcmask 1041409  }
   0xb   :  { %193 = vbcast.lane.b32.xlu1 %v191_v21, 256  ;;  %186 = vbcast.lane.b32.xlu0 %v184_v23, 256  ;;  %v237_v57 = vrot.slane %v218_v24, %v665_v22  ;;  %vm292_vm3 = vcmask 1042434   ;;  %vm294_vm4 = vcmask 1043459   ;;  %vm297_vm5 = vcmask 60416  }
   0xc   :  { %545 = vset.pattern.permute.xlu1 %v581_v56  ;;  %546 = vset.pattern.permute.xlu0 %v581_v56  ;;  %vm463_vm6 = vcmask 519168  }
   0xd   :  { %530 = vmatpush3.bf16.msra.mxu0 %v527_v16  ;;  %541 = vmatpush3.bf16.msra.mxu1 %v527_v16 }
   0xe   :  { %532 = vmatprep.subr.bf16.mxu0 %v531_v25  ;;  %538 = vmatprep.subr.bf16.mxu1 %v531_v25 }
   0xf   :  { %200 = vbcast.lane.b32.xlu1 %v198_v26, 256  ;;  %225 = vbcast.lane.b32.xlu0 %v223_v28, 256 }
  0x11   :  { %534 = vmatpush3.bf16.msra.mxu0 %v531_v25  ;;  %542 = vmatpush3.bf16.msra.mxu1 %v531_v25 }
  0x13   :  { %207 = vbcast.lane.b32.xlu1 %v205_v29, 256 }
  0x14   :  { %514 = vmatmul.mubr.msk.f32.vlgmr.msra.gmra.mrb[0].mxu0 %vm47_vm0, %v29_v30  ;;  %517 = vmatmul.mubr.msk.f32.vlgmr.msra.gmra.mrb[0].mxu1 %vm47_vm0, %v31_v31 }
  0x17   :  { %232 = vbcast.lane.b32.xlu1 %v230_v32, 256 }
  0x7d   :  { %v194_v58 = vpop.permute.xlu1 %193  ;;  %v187_v61 = vpop.permute.xlu0 %186 }
  0x81   :  { %v201_v59 = vpop.permute.xlu1 %200  ;;  %v226_v63 = vpop.permute.xlu0 %225 }
  0x85   :  { %v208_v60 = vpop.permute.xlu1 %207 }
  0x89   :  { %v233_v62 = vpop.permute.xlu1 %232 }
  0xe7   :  { %v515_v34 = vpop.f32.mrb[0].mxu0  ;;  %v518_v35 = vpop.f32.mrb[0].mxu1 }
  0xe8   :  { %v132_v36 = vadd.f32 %v515_v34, %v479_v33  ;;  %v142_v37 = vadd.f32 %v518_v35, %v479_v33  ;;  %v126_v38 = vpop.f32.mrb[1].mxu0  ;;  %v136_v39 = vpop.f32.mrb[1].mxu1 }
  0xe9   :  { %v127_v40 = vadd.f32 %v479_v33, %v126_v38  ;;  %v137_v41 = vadd.f32 %v479_v33, %v136_v39 }
  0xea   :  { %v146_v43 = vmax.f32 %v132_v36, 0.0  ;;  %v148_v44 = vmax.f32 %v142_v37, 0.0 }
  0xeb   :  { %v145_v45 = vmax.f32 %v127_v40, 0.0  ;;  %v147_v46 = vmax.f32 %v137_v41, 0.0 }
  0xec   :  { %v159_v47 = vmul.f32 %v484_v42, %v148_v44  ;;  %v157_v48 = vmul.f32 %v484_v42, %v146_v43 }
  0xed   :  { %v158_v49 = vmul.f32 %v484_v42, %v147_v46  ;;  %v156_v52 = vmul.f32 %v484_v42, %v145_v45 }
  0xee   :  { %v170_v50 = vsel %vm160_vm1, %v159_v47, 0.0  ;;  %v164_v51 = vsel %vm160_vm1, %v157_v48, 0.0 }
  0xef   :  { %171 = vadd.xlane.f32.xlu1 %v170_v50  ;;  %165 = vadd.xlane.f32.xlu0 %v164_v51  ;;  %v167_v53 = vsel %vm160_vm1, %v158_v49, 0.0  ;;  %v161_v54 = vsel %vm160_vm1, %v156_v52, 0.0 }
  0xf3   :  { %168 = vadd.xlane.f32.xlu1 %v167_v53  ;;  %162 = vadd.xlane.f32.xlu0 %v161_v54 }
 0x104   :  { %246 = vbcast.lane.b32.xlu1 %v244_v55, 256 }
 0x109   :  { %239 = vbcast.lane.b32.xlu0 %v237_v57, 256 }
 0x17c   :  { %v172_v1 = vpop.xlane.xlu1 %171  ;;  %v166_v2 = vpop.xlane.xlu0 %165 }
 0x17d   :  { %v176_v3 = vadd.f32 %v174_v0, %v166_v2  ;;  %v178_v10 = vadd.f32 %v174_v0, %v172_v1 }
 0x17f   :  { %v214_v4 = vmul.f32 %v194_v58, %v176_v3  ;;  %v216_v20 = vmul.f32 %v208_v60, %v178_v10  ;;  %v400_v10 = vld [vmem:[%s749_s1 + $0x8] sm:$0xff] }
 0x180   :  { %v169_v5 = vpop.xlane.xlu1 %168  ;;  %v163_v6 = vpop.xlane.xlu0 %162 }
 0x181   :  { %v177_v7 = vadd.f32 %v174_v0, %v169_v5  ;;  %v175_v8 = vadd.f32 %v174_v0, %v163_v6  ;;  %v253_v9 = vadd.f32 %v233_v62, %v214_v4 }
 0x183   :  { %v213_v11 = vmul.f32 %v187_v61, %v175_v8  ;;  %264 = vperm.xlu1 %545, %v253_v9   ;;  %v215_v12 = vmul.f32 %v201_v59, %v177_v7 }
 0x184   :  { %v240_v13 = vpop.permute.xlu0 %239  ;;  %v247_v19 = vpop.permute.xlu1 %246 }
 0x185   :  { %v254_v16 = vadd.f32 %v240_v13, %v215_v12  ;;  %v252_v17 = vadd.f32 %v226_v63, %v213_v11  ;;  %v255_v21 = vadd.f32 %v247_v19, %v216_v20  ;;  %v401_v13 = vld [vmem:[%s749_s1 + $0x10] sm:$0xff] }
 0x187   :  { %261 = vperm.xlu0 %546, %v252_v17   ;;  %267 = vperm.xlu1 %545, %v254_v16  }
 0x18b   :  { %270 = vperm.xlu0 %546, %v255_v21  }
 0x202   :  { %v265_v23 = vpop.permute.xlu1 %264 }
 0x203   :  { %v281_v26 = vrot.slane %v265_v23, %v652_v15 }
 0x206   :  { %v268_v24 = vpop.permute.xlu1 %267  ;;  %v262_v25 = vpop.permute.xlu0 %261 }
 0x207   :  { %v277_v28 = vrot.slane %v262_v25, %v652_v15  ;;  %v285_v29 = vrot.slane %v268_v24, %v652_v15  ;;  %v402_v25 = vld [vmem:[%s749_s1 + $0x18] sm:$0xff] }
 0x209   :  { %v291_v30 = vsel %vm290_vm2, %v281_v26, %v277_v28 }
 0x20a   :  { %v271_v31 = vpop.permute.xlu0 %270  ;;  %v293_v33 = vsel %vm292_vm3, %v285_v29, %v291_v30 }
 0x20b   :  { %v289_v32 = vrot.slane %v271_v31, %v652_v15 }
 0x20d   :  { %v295_v34 = vsel %vm294_vm4, %v289_v32, %v293_v33 }
 0x20e   :  { %v298_v35 = vsel %vm297_vm5, %v295_v34, -inf }
 0x20f   :  { %299 = vmax.xlane.f32.xlu1 %v298_v35 }
 0x29c   :  { %v300_v36 = vpop.xlane.xlu1 %299 }
 0x29d   :  { %v305_v37 = vrot.slane %v300_v36, %v654_v18  ;;  %v309_v38 = vrot.slane %v300_v36, %v650_v14  ;;  %v313_v39 = vrot.slane %v300_v36, %v665_v22  ;;  %v317_v43 = vrot.slane %v300_v36, %v669_v27 }
 0x29f   :  { %v322_v40 = vsub.f32 %v252_v17, %v305_v37  ;;  %v323_v41 = vsub.f32 %v253_v9, %v309_v38  ;;  %v324_v44 = vsub.f32 %v254_v16, %v313_v39  ;;  %v325_v46 = vsub.f32 %v255_v21, %v317_v43 }
 0x2a1   :  { %v326_v42 = vmul.f32 1.442695, %v322_v40  ;;  %v328_v45 = vmul.f32 1.442695, %v323_v41  ;;  %v330_v47 = vmul.f32 1.442695, %v324_v44 }
 0x2a2   :  { %v332_v48 = vmul.f32 1.442695, %v325_v46 }
 0x2a3   :  { %547 = vpow2.f32 %v326_v42 }
 0x2a4   :  { %549 = vpow2.f32 %v328_v45 }
 0x2a5   :  { %551 = vpow2.f32 %v330_v47 }
 0x2a6   :  { %553 = vpow2.f32 %v332_v48 }
 0x2ad   :  { %v548_v49 = vpop.eup %547 }
 0x2ae   :  { %339 = vperm.xlu0 %546, %v548_v49   ;;  %v550_v50 = vpop.eup %549 }
 0x2af   :  { %v552_v51 = vpop.eup %551 }
 0x2b0   :  { %v554_v52 = vpop.eup %553 }
 0x2b2   :  { %342 = vperm.xlu0 %546, %v550_v50  }
 0x2b6   :  { %345 = vperm.xlu0 %546, %v552_v51  }
 0x2ba   :  { %348 = vperm.xlu0 %546, %v554_v52  }
 0x32d   :  { %v340_v53 = vpop.permute.xlu0 %339 }
 0x32e   :  { %v353_v58 = vrot.slane %v340_v53, %v652_v15 }
 0x331   :  { %v343_v54 = vpop.permute.xlu0 %342 }
 0x332   :  { %v357_v56 = vrot.slane %v343_v54, %v652_v15 }
 0x334   :  { %v366_v60 = vsel %vm290_vm2, %v357_v56, %v353_v58 }
 0x335   :  { %v346_v55 = vpop.permute.xlu0 %345 }
 0x336   :  { %v361_v57 = vrot.slane %v346_v55, %v652_v15 }
 0x338   :  { %v367_v62 = vsel %vm292_vm3, %v361_v57, %v366_v60 }
 0x339   :  { %v349_v59 = vpop.permute.xlu0 %348 }
 0x33a   :  { %v365_v61 = vrot.slane %v349_v59, %v652_v15 }
 0x33c   :  { %v368_v63 = vsel %vm294_vm4, %v365_v61, %v367_v62 }
 0x33d   :  { %v370_v0 = vsel %vm297_vm5, %v368_v63, 0.0 }
 0x33e   :  { %371 = vadd.xlane.f32.xlu0 %v370_v0 }
 0x3cb   :  { %v372_v1 = vpop.xlane.xlu0 %371 }
 0x3cc   :  { %555 = vrcp.f32 %v372_v1 }
 0x3d6   :  { %v556_v2 = vpop.eup %555 }
 0x3d7   :  { %v382_v3 = vrot.slane %v556_v2, %v650_v14  ;;  %v378_v4 = vrot.slane %v556_v2, %v654_v18  ;;  %v386_v7 = vrot.slane %v556_v2, %v665_v22  ;;  %v390_v8 = vrot.slane %v556_v2, %v669_v27  ;;  %v399_v14 = vld [vmem:[%s749_s1] sm:$0xff]  ;;  %s582_s1 = smov [#allocation3]  }
 0x3d8   :  { %s471_s12 = sshll.u32 %s582_s1, 4  ;;  %s472_s12 = int_to_ptr.vmem [resolvable:$true] %s471_s12 }
 0x3d9   :  { %v396_v5 = vmul.f32 %v550_v50, %v382_v3  ;;  %v395_v6 = vmul.f32 %v548_v49, %v378_v4  ;;  %v397_v15 = vmul.f32 %v552_v51, %v386_v7  ;;  %v398_v9 = vmul.f32 %v554_v52, %v390_v8  ;;  %s557_s13 = scalar_lea.vmem %s472_s12, 64  ;;  %p562_p1 = scmp.lt.s32.totalorder %s472_s12, %s472_s12 }
 0x3da   :  { %p558_p0 = scmp.ne.s32.totalorder %s472_s12, %s557_s13  ;;  %p563_p2 = scmp.lt.s32.totalorder %s557_s13, %s557_s13 }
 0x3db   :  { %410 = vperm.xlu0 %546, %v396_v5   ;;  %405 = vperm.xlu1 %545, %v395_v6  }
 0x3dc   :  { %p564_p3 = por %p563_p2, %p562_p1 }
 0x3de   :  { %p565_p4 = pnand %p564_p3, %p558_p0 }
 0x3df   :  { %415 = vperm.xlu1 %545, %v397_v15  }
 0x3e3   :  { %420 = vperm.xlu1 %545, %v398_v9  }
 0x45a   :  { %v411_v18 = vpop.permute.xlu0 %410  ;;  %v406_v11 = vpop.permute.xlu1 %405 }
 0x45b   :  { %v424_v12 = vmul.f32 %v411_v18, %v400_v10  ;;  %v423_v22 = vmul.f32 %v406_v11, %v399_v14 }
 0x45d   :  { %v434_v27 = vsel %vm47_vm0, %v424_v12, 0.0  ;;  %v427_v16 = vsel %vm47_vm0, %v423_v22, 0.0 }
 0x45e   :  { %v435_v17 = vrot.slane %v434_v27, 4  ;;  %v428_v19 = vrot.slane %v427_v16, 4  ;;  %v416_v20 = vpop.permute.xlu1 %415 }
 0x45f   :  { %v425_v21 = vmul.f32 %v416_v20, %v401_v13 }
 0x460   :  { %v436_v23 = vadd.f32 %v435_v17, %v434_v27  ;;  %v429_v24 = vadd.f32 %v428_v19, %v427_v16 }
 0x461   :  { %v441_v26 = vsel %vm47_vm0, %v425_v21, 0.0 }
 0x462   :  { %v437_v28 = vrot.slane %v436_v23, 2  ;;  %v430_v29 = vrot.slane %v429_v24, 2  ;;  %v442_v30 = vrot.slane %v441_v26, 4  ;;  %v421_v31 = vpop.permute.xlu1 %420 }
 0x463   :  { %v426_v32 = vmul.f32 %v421_v31, %v402_v25 }
 0x464   :  { %v438_v33 = vadd.f32 %v437_v28, %v436_v23  ;;  %v431_v34 = vadd.f32 %v430_v29, %v429_v24  ;;  %v443_v35 = vadd.f32 %v442_v30, %v441_v26 }
 0x465   :  { %v448_v36 = vsel %vm47_vm0, %v426_v32, 0.0 }
 0x466   :  { %v444_v37 = vrot.slane %v443_v35, 2  ;;  %v449_v38 = vrot.slane %v448_v36, 4  ;;  %v439_v39 = vrot.slane %v438_v33, 1  ;;  %v432_v40 = vrot.slane %v431_v34, 1 }
 0x468   :  { %v445_v41 = vadd.f32 %v444_v37, %v443_v35  ;;  %v450_v42 = vadd.f32 %v449_v38, %v448_v36  ;;  %v440_v45 = vadd.f32 %v439_v39, %v438_v33  ;;  %v433_v46 = vadd.f32 %v432_v40, %v431_v34 }
 0x46a   :  { %v446_v43 = vrot.slane %v445_v41, 1  ;;  %v451_v44 = vrot.slane %v450_v42, 2  ;;  %v459_v51 = vsel %vm290_vm2, %v440_v45, %v433_v46 }
 0x46c   :  { %v452_v47 = vadd.f32 %v451_v44, %v450_v42  ;;  %v447_v48 = vadd.f32 %v446_v43, %v445_v41 }
 0x46e   :  { %v453_v49 = vrot.slane %v452_v47, 1  ;;  %v460_v52 = vsel %vm292_vm3, %v447_v48, %v459_v51 }
 0x470   :  { %v454_v50 = vadd.f32 %v453_v49, %v452_v47 }
 0x472   :  { %v461_v53 = vsel %vm294_vm4, %v454_v50, %v460_v52 }
 0x473   :  { %464 = vst.msk [vmem:[#allocation3] sm:$0xf] %vm463_vm6, %v461_v53 }
 0x474   :  { %568 = shalt.err (!%p565_p4)
}
 0x475   :  { %s569_s16 = scalar_lea.hbm %s755_s7, 64 }
 0x476   :  { %p570_p5 = scmp.ne.s32.totalorder %s755_s7, %s569_s16  ;;  %p573_p6 = scmp.lt.u32.totalorder %s569_s16, %s755_s7 }
 0x478   :  { %p575_p7 = pnand %p573_p6, %p570_p5 }
 0x47a   :  { %578 = shalt.err (!%p575_p7)
}
 0x47b   :  { %474 = dma.vmem_to_hbm [thread:$0]  %s472_s12, 64, %s755_s7, [#allocation4]  }
 0x47c   :  { %579 = dma.done.wait [#allocation4], 64  }
 0x47d   :  { %580 = vsyncadd [#allocation4], 4294967232 }
 0x47e   :  { %478 = vsyncpa [#allocation4], 1 }

</bundles_post_ra>
